<compile_context>
chip_gen: v7x
topology: tpu7x:2x2x1
jax: 0.10.0
libtpu: 0.0.40
codegen_flags: <defaults>
</compile_context>

<pallas_src>
import jax
import jax.numpy as jnp
from jax.experimental import pallas as pl
from jax.experimental.pallas import tpu as pltpu


def _channel_attention_kernel(x_ref, w1_ref, w2_ref, o_ref, m_ref):
    # x_ref : (1, C, TILE_HW)  current (batch, spatial-tile) block
    # w1_ref: (hidden, C)      fc1 weight (out, in)
    # w2_ref: (C, hidden)      fc2 weight (out, in)
    # o_ref : (1, C, 1)        per-batch output block (written on last step)
    # m_ref : (C, TILE_HW)     running-max VMEM scratch (input dtype)
    s = pl.program_id(1)
    n_s = pl.num_programs(1)

    @pl.when(s == 0)
    def _init():
        m_ref[...] = jnp.full_like(m_ref, -jnp.inf)

    # Steady state: elementwise running max only (VPU, input dtype, no cast).
    m_ref[...] = jnp.maximum(m_ref[...], x_ref[0])

    @pl.when(s == n_s - 1)
    def _finalize():
        # Single cross-lane reduce -> (C, 1) pooled column vector.
        pooled = jnp.max(m_ref[...], axis=-1, keepdims=True).astype(jnp.float32)

        # fc1 (1x1 conv, no bias) + ReLU : (hidden, C) @ (C, 1) -> (hidden, 1)
        h = jnp.dot(w1_ref[...].astype(jnp.float32), pooled,
                    preferred_element_type=jnp.float32)
        h = jnp.maximum(h, 0.0)

        # fc2 (1x1 conv, no bias) + sigmoid : (C, hidden) @ (hidden, 1) -> (C, 1)
        out = jnp.dot(w2_ref[...].astype(jnp.float32), h,
                      preferred_element_type=jnp.float32)
        o_ref[0] = jax.nn.sigmoid(out).astype(o_ref.dtype)


def channel_attention(x, w1, w2, *, max_tile_hw=512):
    """x: (B, C, H, W) NCHW; w1: (C//16, C); w2: (C, C//16). Returns (B, C, 1, 1)."""
    B, C, H, W = x.shape
    hidden = w1.shape[0]
    assert w1.shape == (hidden, C) and w2.shape == (C, hidden)
    assert max_tile_hw % 128 == 0

    HW = H * W
    xf = x.reshape(B, C, HW)

    # Choose a spatial tile: full extent if small, otherwise a multiple of 128
    # that (preferably) divides HW; pad the tail with -inf if it doesn't.
    if HW <= max_tile_hw:
        tile = HW
        hw_p = HW
    else:
        tile = None
        for t in range(max_tile_hw, 0, -128):
            if HW % t == 0:
                tile = t
                break
        if tile is None:
            tile = max_tile_hw
        hw_p = pl.cdiv(HW, tile) * tile
        if hw_p != HW:
            xf = jnp.pad(xf, ((0, 0), (0, 0), (0, hw_p - HW)),
                         constant_values=float("-inf"))
    n_s = hw_p // tile

    itemsize = jnp.dtype(x.dtype).itemsize
    cost = pl.CostEstimate(
        flops=B * C * HW + 4 * B * C * hidden,
        transcendentals=B * C,
        bytes_accessed=(B * C * hw_p * itemsize
                        + (w1.size + w2.size) * jnp.dtype(w1.dtype).itemsize
                        + B * C * itemsize),
    )

    out = pl.pallas_call(
        _channel_attention_kernel,
        out_shape=jax.ShapeDtypeStruct((B, C, 1), x.dtype),
        grid_spec=pltpu.PrefetchScalarGridSpec(
            num_scalar_prefetch=0,
            grid=(B, n_s),
            in_specs=[
                pl.BlockSpec((1, C, tile), lambda b, s: (b, 0, s)),
                pl.BlockSpec((hidden, C), lambda b, s: (0, 0)),
                pl.BlockSpec((C, hidden), lambda b, s: (0, 0)),
            ],
            out_specs=pl.BlockSpec((1, C, 1), lambda b, s: (b, 0, 0)),
            scratch_shapes=[pltpu.VMEM((C, tile), x.dtype)],
        ),
        compiler_params=pltpu.CompilerParams(
            dimension_semantics=("parallel", "arbitrary")),
        cost_estimate=cost,
    )(xf, w1, w2)
    return out.reshape(B, C, 1, 1)


if __name__ == "__main__":
    # Small shapes consistent with the module: ratio is hard-coded to 16 in
    # fc1, so channels must be >= 16 for a non-degenerate hidden dim.
    B, C, H, W = 2, 32, 16, 16
    hidden = C // 16  # = 2

    key = jax.random.PRNGKey(0)
    kx, k1, k2 = jax.random.split(key, 3)

    x = jax.random.normal(kx, (B, C, H, W), dtype=jnp.float32)
    # Deterministic "conv" weights (1x1 convs without bias == dense matrices).
    w1 = jax.random.normal(k1, (hidden, C), dtype=jnp.float32) * (1.0 / jnp.sqrt(C))
    w2 = jax.random.normal(k2, (C, hidden), dtype=jnp.float32) * (1.0 / jnp.sqrt(hidden))

    out = channel_attention(x, w1, w2)
    jax.block_until_ready(out)

    # Pure-JAX reference (same math, outside Pallas).
    pooled = jnp.max(x, axis=(2, 3))                               # (B, C)
    ref = jax.nn.sigmoid(jnp.maximum(pooled @ w1.T, 0.0) @ w2.T)   # (B, C)
    ref = ref.reshape(B, C, 1, 1)
    assert out.shape == (B, C, 1, 1)
    assert jnp.allclose(out, ref, atol=1e-5, rtol=1e-5)

    print("KERNEL_OK")
</pallas_src>

<mosaic_0001>
module attributes {stable_mosaic.version = 11 : i64} {
  func.func @_channel_attention_kernel(%arg0: i32, %arg1: i32, %arg2: memref<1x32x256xf32, #tpu.memory_space<vmem>>, %arg3: memref<2x32xf32, #tpu.memory_space<vmem>>, %arg4: memref<32x2xf32, #tpu.memory_space<vmem>>, %arg5: memref<1x32x1xf32, #tpu.memory_space<vmem>>, %arg6: memref<32x256xf32, #tpu.memory_space<vmem>>) attributes {dimension_semantics = [#tpu.dimension_semantics<parallel>, #tpu.dimension_semantics<arbitrary>], iteration_bounds = array<i64: 2, 1>, scalar_prefetch = 0 : i64, scratch_operands = 1 : i64, tpu.core_type = #tpu.core_type<tc>, window_params = [{transform_indices = @transform_0, window_bounds = array<i64: 1, 32, 256>}, {pipeline_mode = #tpu.pipeline_mode<synchronous>, transform_indices = @transform_1, window_bounds = array<i64: 2, 32>}, {pipeline_mode = #tpu.pipeline_mode<synchronous>, transform_indices = @transform_2, window_bounds = array<i64: 32, 2>}, {transform_indices = @transform_3, window_bounds = array<i64: 1, 32, 1>}]} {
    %c0_i32 = arith.constant 0 : i32
    %0 = arith.cmpi eq, %arg1, %c0_i32 : i32
    %1 = arith.extui %0 : i1 to i32
    %c0_i32_0 = arith.constant 0 : i32
    %2 = arith.cmpi ne, %1, %c0_i32_0 : i32
    scf.if %2 {
      %cst = arith.constant 0xFF800000 : f32
      %11 = vector.broadcast %cst : f32 to vector<32x256xf32>
      %c0_9 = arith.constant 0 : index
      %c0_10 = arith.constant 0 : index
      %12 = vector.load %arg6[%c0_9, %c0_10] : memref<32x256xf32, #tpu.memory_space<vmem>>, vector<32x256xf32>
      tpu.vector_store %arg6[%c0_9, %c0_10], %11 {strides = array<i32>} : memref<32x256xf32, #tpu.memory_space<vmem>>, vector<32x256xf32>,
    } else {
    }
    %c0 = arith.constant 0 : index
    %c0_1 = arith.constant 0 : index
    %3 = vector.load %arg6[%c0, %c0_1] : memref<32x256xf32, #tpu.memory_space<vmem>>, vector<32x256xf32>
    %c0_2 = arith.constant 0 : index
    %c0_3 = arith.constant 0 : index
    %c0_4 = arith.constant 0 : index
    %4 = vector.load %arg2[%c0_2, %c0_3, %c0_4] : memref<1x32x256xf32, #tpu.memory_space<vmem>>, vector<1x32x256xf32>
    %5 = vector.shape_cast %4 : vector<1x32x256xf32> to vector<32x256xf32>
    %6 = arith.maximumf %3, %5 : vector<32x256xf32>
    %c0_5 = arith.constant 0 : index
    %c0_6 = arith.constant 0 : index
    %7 = vector.load %arg6[%c0_5, %c0_6] : memref<32x256xf32, #tpu.memory_space<vmem>>, vector<32x256xf32>
    tpu.vector_store %arg6[%c0_5, %c0_6], %6 {strides = array<i32>} : memref<32x256xf32, #tpu.memory_space<vmem>>, vector<32x256xf32>,
    %c0_i32_7 = arith.constant 0 : i32
    %8 = arith.cmpi eq, %arg1, %c0_i32_7 : i32
    %9 = arith.extui %8 : i1 to i32
    %c0_i32_8 = arith.constant 0 : i32
    %10 = arith.cmpi ne, %9, %c0_i32_8 : i32
    scf.if %10 {
      %c0_9 = arith.constant 0 : index
      %c0_10 = arith.constant 0 : index
      %11 = vector.load %arg6[%c0_9, %c0_10] : memref<32x256xf32, #tpu.memory_space<vmem>>, vector<32x256xf32>
      %cst = arith.constant dense<0xFF800000> : vector<32xf32>
      %12 = vector.multi_reduction <maximumf>, %11, %cst [1] : vector<32x256xf32> to vector<32xf32>
      %13 = vector.shape_cast %12 : vector<32xf32> to vector<32x1xf32>
      %c0_11 = arith.constant 0 : index
      %c0_12 = arith.constant 0 : index
      %14 = vector.load %arg3[%c0_11, %c0_12] : memref<2x32xf32, #tpu.memory_space<vmem>>, vector<2x32xf32>
      %cst_13 = arith.constant dense<0.000000e+00> : vector<2x1xf32>
      %15 = tpu.matmul %14, %13, %cst_13 {dimension_numbers = #tpu.dot_dimension_numbers<[1], [0], [0], [1], [0, 0, 1, 1], [], []>} : vector<2x32xf32>, vector<32x1xf32>, vector<2x1xf32> -> vector<2x1xf32>
      %cst_14 = arith.constant 0.000000e+00 : f32
      %16 = vector.broadcast %cst_14 : f32 to vector<2x1xf32>
      %17 = arith.maximumf %15, %16 : vector<2x1xf32>
      %c0_15 = arith.constant 0 : index
      %c0_16 = arith.constant 0 : index
      %18 = vector.load %arg4[%c0_15, %c0_16] : memref<32x2xf32, #tpu.memory_space<vmem>>, vector<32x2xf32>
      %cst_17 = arith.constant dense<0.000000e+00> : vector<32x1xf32>
      %19 = tpu.matmul %18, %17, %cst_17 {dimension_numbers = #tpu.dot_dimension_numbers<[1], [0], [0], [1], [0, 0, 1, 1], [], []>} : vector<32x2xf32>, vector<2x1xf32>, vector<32x1xf32> -> vector<32x1xf32>
      %20 = arith.negf %19 : vector<32x1xf32>
      %21 = math.exp %20 : vector<32x1xf32>
      %cst_18 = arith.constant 1.000000e+00 : f32
      %22 = vector.broadcast %cst_18 : f32 to vector<32x1xf32>
      %23 = arith.addf %22, %21 : vector<32x1xf32>
      %24 = arith.divf %22, %23 : vector<32x1xf32>
      %c0_19 = arith.constant 0 : index
      %c0_20 = arith.constant 0 : index
      %c0_21 = arith.constant 0 : index
      %25 = vector.load %arg5[%c0_19, %c0_20, %c0_21] : memref<1x32x1xf32, #tpu.memory_space<vmem>>, vector<1x32x1xf32>
      %26 = vector.shape_cast %25 : vector<1x32x1xf32> to vector<32x1xf32>
      %27 = vector.shape_cast %24 : vector<32x1xf32> to vector<1x32x1xf32>
      tpu.vector_store %arg5[%c0_19, %c0_20, %c0_21], %27 {strides = array<i32>} : memref<1x32x1xf32, #tpu.memory_space<vmem>>, vector<1x32x1xf32>,
    } else {
    }
    return
  }
  func.func @transform_0(%arg0: i32, %arg1: i32) -> (i32, i32, i32) {
    %c0_i32 = arith.constant 0 : i32
    %c0_i32_0 = arith.constant 0 : i32
    return %arg0, %c0_i32, %arg1 : i32, i32, i32
  }
  func.func @transform_1(%arg0: i32, %arg1: i32) -> (i32, i32) {
    %c0_i32 = arith.constant 0 : i32
    %c0_i32_0 = arith.constant 0 : i32
    %c0_i32_1 = arith.constant 0 : i32
    return %c0_i32, %c0_i32_0 : i32, i32
  }
  func.func @transform_2(%arg0: i32, %arg1: i32) -> (i32, i32) {
    %c0_i32 = arith.constant 0 : i32
    %c0_i32_0 = arith.constant 0 : i32
    %c0_i32_1 = arith.constant 0 : i32
    return %c0_i32, %c0_i32_0 : i32, i32
  }
  func.func @transform_3(%arg0: i32, %arg1: i32) -> (i32, i32, i32) {
    %c0_i32 = arith.constant 0 : i32
    %c0_i32_0 = arith.constant 0 : i32
    %c0_i32_1 = arith.constant 0 : i32
    return %arg0, %c0_i32, %c0_i32_0 : i32, i32, i32
  }
}

</mosaic_0001>

<bundles_post_ra>
// kernel: tpu_custom_call.1
= control target key start
LH: loop header
LB: loop body
LE: loop exit
PB: predicated region body
PF: predicated region fallthrough
CT: control target
= control target key end

     0   :  { %8 = vsyncpa [#allocation4], 0  ;;  %s947_s0 = inlined_call_operand.hbm [shape: f32[2,32,256], index: 0, kind: input, shape index: {}]   ;;  %s948_s1 = inlined_call_operand.vmem [shape: f32[2,32], index: 1, kind: input, shape index: {}]   ;;  %s949_s2 = inlined_call_operand.vmem [shape: f32[32,2], index: 2, kind: input, shape index: {}]   ;;  %s950_s3 = inlined_call_operand.vmem [shape: f32[2,32,1], index: 3, kind: output, shape index: {}]  }
   0x1   :  { %10 = vsyncpa [#allocation4 + $0x1], 0  ;;  %s808_s12 = smov 0   ;;  %s810_s13 = smov 0  }
   0x2   :  { %s812_s14 = smov 0   ;;  %s814_s15 = smov 0  }
   0x3   :  { %s816_s16 = smov 0   ;;  %s818_s17 = smov 0  }
   0x4 LB: > { %s564_s18 = sadd.s32 4294967295, %s780_s17   ;;  %s28_s19 = sadd.s32 1, %s776_s16  ;;  %s780_s17 = sphi %s818_s17, %s16_s17   ;;  %s776_s16 = sphi %s816_s16, %s958_s16   ;;  %s772_s15 = sphi %s814_s15, %s957_s15   ;;  %s768_s14 = sphi %s812_s14, %s956_s14   ;;  %s764_s13 = sphi %s810_s13, %s955_s13   ;;  %s760_s12 = sphi %s808_s12, %s954_s12  }
   0x5   : > { %p30_p0 = scmp.ge.s32.totalorder %s28_s19, 2  ;;  %s37_s20 = sadd.s32 1, %s768_s14 }
   0x6   : > { %p44_p1 = scmp.ne.s32.totalorder %s768_s14, %s764_s13  ;;  %p45_p2 = scmp.eq.s32.totalorder %s780_s17, 0 }
   0x7   : > { %s960_s19 = smov (%p30_p0, %s28_s19), 0  ;;  %p50_p4 = scmp.ne.s32.totalorder %s764_s13, %s760_s12 }
   0x8   : > { %p844_p3 = por %p45_p2, %p44_p1  ;;  %s32_s22 = ssub.s32 %s776_s16, %s960_s19 }
   0x9   : > { %p51_p5 = scmp.eq.s32.totalorder %s564_s18, 0  ;;  %p35_p6 = scmp.eq.s32.totalorder %s32_s22, 0 }
   0xa   : > { %p630_p8 = scmp.lt.s32.totalorder %s780_s17, 2  ;;  %s148_s25 = sand.u32 1, %s768_s14  }
   0xb   : > { %p851_p7 = por %p51_p5, %p50_p4  ;;  %s587_s26 = sshll.u32 %s776_s16, 10 }
   0xc   : > { %s857_s24 = scalar_select %p35_p6, %s768_s14, %s37_s20  }
   0xd   : > { %s568_s27 = sshll.u32 %s148_s25, 6  ;;  %s864_s30 = scalar_lea.hbm %s947_s0, %s587_s26 }
   0xe   : > { %s152_s4 = scalar_lea.vmem [#allocation3], %s568_s27  ;;  %p868_p9 = pnand %p630_p8, %p844_p3 }
   0xf   : > { %s161_s5 = sshll.u32 %s152_s4, 4  ;;  %s874_s7 = scalar_lea.sflag [#allocation4], %s148_s25  ;;  %s872_s5 = int_to_ptr.vmem [resolvable:$true] %s161_s5 }
  0x10   : > { %s700_s8 = scalar_lea.hbm %s864_s30, 1024  ;;  %p702_p11 = pneg %p868_p9 }
  0x11   : > { %p701_p10 = scmp.ne.s32.totalorder %s864_s30, %s700_s8  ;;  %s705_s11 = scalar_lea.hbm %s947_s0, 2048 }
  0x12   : > { %p706_p0 = scmp.lt.u32.totalorder %s864_s30, %s947_s0  ;;  %p707_p1 = scmp.lt.u32.totalorder %s705_s11, %s700_s8 }
  0x13   : > { %p703_p12 = pnand %p702_p11, %p701_p10  ;;  %p709_p3 = scmp.lt.u32.totalorder %s700_s8, %s864_s30 }
  0x14   : > { %p708_p2 = por %p707_p1, %p706_p0 }
  0x15   : > { %p704_p13 = pneg %p703_p12 }
  0x16   : > { %p710_p4 = por %p709_p3, %p708_p2 }
  0x18   : > { %p711_p5 = pnand %p710_p4, %p704_p13 }
  0x1a   : > { %714 = shalt.err (!%p711_p5)
}
  0x1b   : > { %s715_s20 = scalar_lea.vmem %s872_s5, 1024  ;;  %s782_s21 = smov [#allocation3]  }
  0x1c   : > { %p716_p6 = scmp.ne.s32.totalorder %s872_s5, %s715_s20  ;;  %s720_s22 = sshll.u32 %s782_s21, 4  ;;  %s721_s22 = int_to_ptr.vmem [resolvable:$false] %s720_s22 }
  0x1d   : > { %s722_s25 = scalar_lea.vmem %s721_s22, 2048  ;;  %p723_p12 = scmp.lt.s32.totalorder %s872_s5, %s721_s22 }
  0x1e   : > { %p718_p8 = pnand %p716_p6, %p702_p11  ;;  %p724_p0 = scmp.lt.s32.totalorder %s722_s25, %s715_s20 }
  0x20   : > { %p719_p10 = pneg %p718_p8  ;;  %p725_p1 = por %p724_p0, %p723_p12 }
  0x22   : > { %p726_p2 = pnand %p725_p1, %p719_p10 }
  0x24   : > { %729 = shalt.err (!%p726_p2)
}
  0x25   : > { %s783_s26 = smov 256   ;;  %s784_s27 = smov 16  }
  0x26   : > { %629 = dma.hbm_to_vmem [thread:$0]  (!%p868_p9), %s864_s30, 1024, %s872_s5, %s874_s7, %s783_s26, %s783_s26, %s784_s27  }
  0x27   : > { %p571_p11 = scmp.ge.s32.totalorder %s780_s17, 1  ;;  %p169_p13 = scmp.lt.s32.totalorder %s780_s17, 3 }
  0x29   : > { %p170_p3 = pnand %p571_p11, %p169_p13 }
  0x2a   : > { %s175_s28 = sand.u32 (!%p170_p3), 1, %s764_s13  }
  0x2b   : > { %173 = sbr.rel (%p170_p3) target bundleno = 670 (0x29e), region = 32  ;;  %s572_s29 = sshll.u32 (!%p170_p3), %s175_s28, 6 }
  0x2c   : > { %s176_s4 = scalar_lea.sflag (!%p170_p3), [#allocation4], %s175_s28  ;;  %s179_s8 = scalar_lea.vmem (!%p170_p3), [#allocation3], %s572_s29 }
  0x32   : > { %755 = dma.done.wait (%p851_p7), %s176_s4, 1024  }
  0x33   : > { %757 = vsyncadd (%p851_p7), %s176_s4, 4294966272  ;;  %v232_v0 = vld [vmem:[%s179_s8 + $0x20] sm:$0xff]  ;;  %v233_v1 = vld [vmem:[%s179_s8 + $0x28] sm:$0xff]  ;;  %v785_v12 = vmov 0.0|0.0   ;;  %vm786_vm0 = vmmov 0   ;;  %v787_v13 = vmov 0.0  }
  0x34   : > { %v228_v2 = vld [vmem:[%s179_s8] sm:$0xff]  ;;  %v269_v3 = vmax.f32 %v232_v0, %v233_v1  ;;  %v229_v4 = vld [vmem:[%s179_s8 + $0x8] sm:$0xff]  ;;  %v234_v5 = vld [vmem:[%s179_s8 + $0x30] sm:$0xff]  ;;  %618 = vmatprep.subr.bf16.mxu0 %v785_v12  ;;  %607 = vmatprep.mubr.msk.f32.mxu0 %vm786_vm0, %v787_v13  ;;  %vm276_vm1 = vcmask 261120   ;;  %vm355_vm2 = vcmask 15360   ;;  %vm368_vm3 = vcmask 1041408  }
  0x35   : > { %v235_v6 = vld [vmem:[%s179_s8 + $0x38] sm:$0xff]  ;;  %v263_v7 = vmax.f32 %v228_v2, %v229_v4  ;;  %v230_v8 = vld [vmem:[%s179_s8 + $0x10] sm:$0xff]  ;;  %v275_v20 = vld [vmem:[%s948_s1] sm:$0x3]  ;;  %p203_p7 = scmp.lt.s32.totalorder %s772_s15, 1  ;;  %vm481_vm4 = vcmask 7168  }
  0x36   : > { %v231_v9 = vld [vmem:[%s179_s8 + $0x18] sm:$0xff]  ;;  %270 = vmax.xlane.f32.xlu1 %v269_v3  ;;  %v272_v10 = vmax.f32 %v234_v5, %v235_v6  ;;  %v351_v21 = vld [vmem:[%s949_s2] sm:$0xff]  ;;  %v352_v25 = vld [vmem:[%s949_s2 + $0x8] sm:$0xff] }
  0x37   : > { %264 = vmax.xlane.f32.xlu0 %v263_v7  ;;  %v266_v11 = vmax.f32 %v230_v8, %v231_v9  ;;  %612 = vmatprep.mubr.msk.f32.mxu1 %vm355_vm2, %v351_v21  ;;  %v353_v26 = vld [vmem:[%s949_s2 + $0x10] sm:$0xff]  ;;  %v354_v27 = vld [vmem:[%s949_s2 + $0x18] sm:$0xff]  ;;  %s962_s15 = smov (!%p203_p7, %s772_s15), 1 }
  0x38   : > { %s588_s20 = sshll.u32 %s962_s15, 5 }
  0x39   : > { %s207_s25 = scalar_lea.vmem %s950_s3, %s588_s20 }
  0x3a   : > { %273 = vmax.xlane.f32.xlu1 %v272_v10 }
  0x3b   : > { %267 = vmax.xlane.f32.xlu0 %v266_v11 }
  0xc3   : > { %v271_v14 = vpop.xlane.xlu1 %270 }
  0xc4   : > { %v265_v15 = vpop.xlane.xlu0 %264 }
  0xc7   : > { %v274_v18 = vpop.xlane.xlu1 %273 }
  0xc8   : > { %v268_v16 = vpop.xlane.xlu0 %267  ;;  %v622_v19 = vpack.c.bf16 %v274_v18, %v271_v14 }
  0xc9   : > { %v619_v17 = vpack.c.bf16 %v268_v16, %v265_v15 }
  0xcb   : > { %620 = vmatpush3.bf16.msra.mxu0 %v619_v17 }
  0xcc   : > { %621 = vmatprep.subr.bf16.mxu0 %v785_v12 }
  0xcf   : > { %623 = vmatpush3.bf16.msra.mxu0 %v622_v19 }
  0xd2   : > { %608 = vmatmul.mubr.msk.f32.vlgmr.msra.gmra.mrb[0].mxu0 %vm276_vm1, %v275_v20 }
 0x1a5   : > { %v346_v22 = vpop.f32.mrb[0].mxu0 }
 0x1a6   : > { %v350_v23 = vmax.f32 %v346_v22, 0.0  ;;  %v609_v24 = vpop.f32.mrb[1].mxu0 }
 0x1a8   : > { %610 = vmatprep.subr.msk.mxu1 %vm368_vm3, %v350_v23 }
 0x1a9   : > { %611 = vmatpush3.msk.msra.mxu1 %vm368_vm3, %v350_v23 }
 0x1aa   : > { %613 = vmatmul.mubr.msk.f32.vlgmr.msra.gmra.mrb[0].mxu1 %vm355_vm2, %v352_v25 }
 0x1ab   : > { %615 = vmatprep.mubr.msk.f32.mxu1 %vm355_vm2, %v353_v26 }
 0x1ae   : > { %616 = vmatmul.mubr.msk.f32.gmra.mrb[2].mxu1 %vm355_vm2, %v354_v27 }
 0x27d   : > { %v614_v28 = vpop.f32.mrb[0].mxu1 }
 0x27e   : > { %v582_v29 = vmul.f32 -1.442695, %v614_v28  ;;  %v438_v30 = vpop.f32.mrb[1].mxu1 }
 0x27f   : > { %v581_v31 = vmul.f32 -1.442695, %v438_v30 }
 0x280   : > { %684 = vpow2.f32 %v582_v29 }
 0x281   : > { %686 = vpow2.f32 %v581_v31  ;;  %v617_v32 = vpop.f32.mrb[2].mxu1 }
 0x282   : > { %v584_v33 = vmul.f32 -1.442695, %v617_v32  ;;  %v448_v34 = vpop.f32.mrb[3].mxu1 }
 0x283   : > { %v583_v35 = vmul.f32 -1.442695, %v448_v34 }
 0x284   : > { %688 = vpow2.f32 %v584_v33 }
 0x285   : > { %690 = vpow2.f32 %v583_v35 }
 0x28a   : > { %v685_v36 = vpop.eup %684 }
 0x28b   : > { %v687_v37 = vpop.eup %686  ;;  %v470_v38 = vadd.f32 1.0, %v685_v36 }
 0x28c   : > { %v469_v39 = vadd.f32 1.0, %v687_v37 }
 0x28d   : > { %692 = vrcp.f32 %v470_v38 }
 0x28e   : > { %v689_v40 = vpop.eup %688  ;;  %694 = vrcp.f32 %v469_v39 }
 0x28f   : > { %v691_v41 = vpop.eup %690  ;;  %v472_v42 = vadd.f32 1.0, %v689_v40 }
 0x290   : > { %v471_v43 = vadd.f32 1.0, %v691_v41 }
 0x291   : > { %696 = vrcp.f32 %v472_v42 }
 0x292   : > { %698 = vrcp.f32 %v471_v43 }
 0x297   : > { %v693_v44 = vpop.eup %692 }
 0x298   : > { %v695_v45 = vpop.eup %694  ;;  %483 = vst.msk [vmem:[%s207_s25 + $0x8] sm:$0xff] %vm481_vm4, %v693_v44 }
 0x299   : > { %482 = vst.msk [vmem:[%s207_s25] sm:$0xff] %vm481_vm4, %v695_v45 }
 0x29b   : > { %v697_v46 = vpop.eup %696 }
 0x29c   : > { %v699_v47 = vpop.eup %698  ;;  %485 = vst.msk [vmem:[%s207_s25 + $0x18] sm:$0xff] %vm481_vm4, %v697_v46 }
 0x29d   : > { %484 = vst.msk [vmem:[%s207_s25 + $0x10] sm:$0xff] %vm481_vm4, %v699_v47 }
 0x29e PF: > { %s16_s17 = sadd.s32 1, %s780_s17   ;;  %s954_s12 = smov %s764_s13 }
 0x29f   : > { %p13_p9 = scmp.ge.s32.totalorder %s16_s17, 4   ;;  %s955_s13 = smov %s768_s14 }
 0x2a0   : > { %s956_s14 = smov %s857_s24  ;;  %s957_s15 = smov %s776_s16 }
 0x2a1   : > { %s958_s16 = smov %s960_s19  ;;  %15 = sbr.rel (!%p13_p9) target bundleno = 4 (0x4), region = 80 }
 0x2a8   :  { %507 = vsyncpa [#allocation4], 1 }
 0x2a9   :  { %509 = vsyncpa [#allocation4 + $0x1], 1 }

</bundles_post_ra>
